<compile_context>
chip_gen: v7x
topology: tpu7x:2x2x1
jax: 0.10.0
libtpu: 0.0.40
codegen_flags: <defaults>
</compile_context>

<pallas_src>
import jax
import jax.numpy as jnp
from jax.experimental import pallas as pl
from jax.experimental.pallas import tpu as pltpu

HIDDEN_SIZE = 64
LANE = 128


def _round_up(n, m):
    return ((n + m - 1) // m) * m


def mlp_kernel(x_ref, w1_ref, b1_ref, w2_ref, b2_ref, o_ref):
    # fc1: bf16 inputs on the MXU, f32 accumulation.
    h = jnp.dot(x_ref[...], w1_ref[...], preferred_element_type=jnp.float32)
    # bias add + sigmoid in f32 (biases are already (1, H) VMEM blocks; the
    # broadcast happens once per step inside the add -- no explicit broadcast_to).
    h = jax.nn.sigmoid(h + b1_ref[...])
    # fc2: cast activations back to bf16 for the MXU, accumulate in f32.
    out = jnp.dot(h.astype(w2_ref.dtype), w2_ref[...],
                  preferred_element_type=jnp.float32)
    out = out + b2_ref[...]
    # Lane-dense store: o_ref's last dim is padded to a multiple of 128.
    o_ref[...] = out.astype(o_ref.dtype)


def mlp_forward(x, w1, b1, w2, b2, *, block_b=1024):
    """x: [B, D_in]; w1: [D_in, H]; b1: [H]; w2: [H, D_out]; b2: [D_out]."""
    B, D_in = x.shape
    H = w1.shape[1]
    D_out = w2.shape[1]
    out_dtype = x.dtype

    # --- batch tiling ---------------------------------------------------
    tb = min(block_b, _round_up(B, 8))        # sublane-aligned batch tile
    B_pad = _round_up(B, tb)
    if B_pad != B:
        x = jnp.pad(x, ((0, B_pad - B), (0, 0)))
    grid = (B_pad // tb,)

    # --- lane-dense output padding (D_out=8 -> 128 lanes) ----------------
    D_out_pad = _round_up(D_out, LANE)
    if D_out_pad != D_out:
        w2 = jnp.pad(w2, ((0, 0), (0, D_out_pad - D_out)))
        b2 = jnp.pad(b2, ((0, D_out_pad - D_out),))

    # --- dtype at the call boundary: bf16 matmul operands, f32 biases ----
    x_bf = x.astype(jnp.bfloat16)
    w1_bf = w1.astype(jnp.bfloat16)
    w2_bf = w2.astype(jnp.bfloat16)
    b1_2d = b1.reshape(1, H).astype(jnp.float32)
    b2_2d = b2.reshape(1, D_out_pad).astype(jnp.float32)

    out_padded = pl.pallas_call(
        mlp_kernel,
        out_shape=jax.ShapeDtypeStruct((B_pad, D_out_pad), out_dtype),
        grid=grid,
        in_specs=[
            pl.BlockSpec((tb, D_in), lambda i: (i, 0)),        # x tile
            pl.BlockSpec((D_in, H), lambda i: (0, 0)),         # w1 (resident)
            pl.BlockSpec((1, H), lambda i: (0, 0)),            # b1 (resident)
            pl.BlockSpec((H, D_out_pad), lambda i: (0, 0)),    # w2 (resident)
            pl.BlockSpec((1, D_out_pad), lambda i: (0, 0)),    # b2 (resident)
        ],
        out_specs=pl.BlockSpec((tb, D_out_pad), lambda i: (i, 0)),
        compiler_params=pltpu.CompilerParams(
            dimension_semantics=("parallel",)),
    )(x_bf, w1_bf, b1_2d, w2_bf, b2_2d)

    # Strip batch / lane padding in the wrapper.
    return out_padded[:B, :D_out]


def init_params(key, d_in, hidden, d_out):
    """Deterministic init mimicking nn.Linear's uniform(-1/sqrt(fan_in), +)."""
    k1, k2, k3, k4 = jax.random.split(key, 4)
    lim1 = 1.0 / jnp.sqrt(d_in)
    lim2 = 1.0 / jnp.sqrt(hidden)
    # PyTorch stores weight as [out, in]; we keep [in, out] for plain matmuls.
    w1 = jax.random.uniform(k1, (d_in, hidden), jnp.float32, -lim1, lim1)
    b1 = jax.random.uniform(k2, (hidden,), jnp.float32, -lim1, lim1)
    w2 = jax.random.uniform(k3, (hidden, d_out), jnp.float32, -lim2, lim2)
    b2 = jax.random.uniform(k4, (d_out,), jnp.float32, -lim2, lim2)
    return w1, b1, w2, b2


if __name__ == "__main__":
    B, D_IN, D_OUT = 8, 32, 8  # train_x.shape[1]=32, train_y.shape[1]=8 (synthetic)

    key = jax.random.PRNGKey(0)
    kx, kp = jax.random.split(key)
    x = jax.random.normal(kx, (B, D_IN), jnp.float32)
    w1, b1, w2, b2 = init_params(kp, D_IN, HIDDEN_SIZE, D_OUT)

    out = mlp_forward(x, w1, b1, w2, b2)
    out = jax.block_until_ready(out)

    # Pure-JAX reference replicating the kernel's bf16 matmul rounding.
    f32 = jnp.float32
    xb = x.astype(jnp.bfloat16).astype(f32)
    w1b = w1.astype(jnp.bfloat16).astype(f32)
    w2b = w2.astype(jnp.bfloat16).astype(f32)
    h = jax.nn.sigmoid(
        jnp.dot(xb, w1b, precision=jax.lax.Precision.HIGHEST) + b1)
    hb = h.astype(jnp.bfloat16).astype(f32)
    ref = jnp.dot(hb, w2b, precision=jax.lax.Precision.HIGHEST) + b2

    assert out.shape == (B, D_OUT)
    assert jnp.allclose(out, ref, atol=2e-3, rtol=2e-3)

    print("KERNEL_OK")
</pallas_src>

<mosaic_0001>
module attributes {stable_mosaic.version = 11 : i64} {
  func.func @mlp_kernel(%arg0: i32, %arg1: memref<8x32xbf16, #tpu.memory_space<vmem>>, %arg2: memref<32x64xbf16, #tpu.memory_space<vmem>>, %arg3: memref<1x64xf32, #tpu.memory_space<vmem>>, %arg4: memref<64x128xbf16, #tpu.memory_space<vmem>>, %arg5: memref<1x128xf32, #tpu.memory_space<vmem>>, %arg6: memref<8x128xf32, #tpu.memory_space<vmem>>) attributes {dimension_semantics = [#tpu.dimension_semantics<parallel>], iteration_bounds = array<i64: 1>, scalar_prefetch = 0 : i64, scratch_operands = 0 : i64, tpu.core_type = #tpu.core_type<tc>, window_params = [{transform_indices = @transform_0, window_bounds = array<i64: 8, 32>}, {pipeline_mode = #tpu.pipeline_mode<synchronous>, transform_indices = @transform_1, window_bounds = array<i64: 32, 64>}, {pipeline_mode = #tpu.pipeline_mode<synchronous>, transform_indices = @transform_2, window_bounds = array<i64: 1, 64>}, {pipeline_mode = #tpu.pipeline_mode<synchronous>, transform_indices = @transform_3, window_bounds = array<i64: 64, 128>}, {pipeline_mode = #tpu.pipeline_mode<synchronous>, transform_indices = @transform_4, window_bounds = array<i64: 1, 128>}, {transform_indices = @transform_5, window_bounds = array<i64: 8, 128>}]} {
    %c0 = arith.constant 0 : index
    %c0_0 = arith.constant 0 : index
    %0 = vector.load %arg1[%c0, %c0_0] : memref<8x32xbf16, #tpu.memory_space<vmem>>, vector<8x32xbf16>
    %c0_1 = arith.constant 0 : index
    %c0_2 = arith.constant 0 : index
    %1 = vector.load %arg2[%c0_1, %c0_2] : memref<32x64xbf16, #tpu.memory_space<vmem>>, vector<32x64xbf16>
    %cst = arith.constant dense<0.000000e+00> : vector<8x64xf32>
    %2 = tpu.matmul %0, %1, %cst {dimension_numbers = #tpu.dot_dimension_numbers<[1], [0], [0], [1], [0, 0, 1, 1], [], []>} : vector<8x32xbf16>, vector<32x64xbf16>, vector<8x64xf32> -> vector<8x64xf32>
    %c0_3 = arith.constant 0 : index
    %c0_4 = arith.constant 0 : index
    %3 = vector.load %arg3[%c0_3, %c0_4] : memref<1x64xf32, #tpu.memory_space<vmem>>, vector<1x64xf32>
    %4 = vector.broadcast %3 : vector<1x64xf32> to vector<8x64xf32>
    %5 = arith.addf %2, %4 : vector<8x64xf32>
    %6 = arith.negf %5 : vector<8x64xf32>
    %7 = math.exp %6 : vector<8x64xf32>
    %cst_5 = arith.constant 1.000000e+00 : f32
    %8 = vector.broadcast %cst_5 : f32 to vector<8x64xf32>
    %9 = arith.addf %8, %7 : vector<8x64xf32>
    %10 = arith.divf %8, %9 : vector<8x64xf32>
    %11 = arith.truncf %10 : vector<8x64xf32> to vector<8x64xbf16>
    %c0_6 = arith.constant 0 : index
    %c0_7 = arith.constant 0 : index
    %12 = vector.load %arg4[%c0_6, %c0_7] : memref<64x128xbf16, #tpu.memory_space<vmem>>, vector<64x128xbf16>
    %cst_8 = arith.constant dense<0.000000e+00> : vector<8x128xf32>
    %13 = tpu.matmul %11, %12, %cst_8 {dimension_numbers = #tpu.dot_dimension_numbers<[1], [0], [0], [1], [0, 0, 1, 1], [], []>} : vector<8x64xbf16>, vector<64x128xbf16>, vector<8x128xf32> -> vector<8x128xf32>
    %c0_9 = arith.constant 0 : index
    %c0_10 = arith.constant 0 : index
    %14 = vector.load %arg5[%c0_9, %c0_10] : memref<1x128xf32, #tpu.memory_space<vmem>>, vector<1x128xf32>
    %15 = vector.broadcast %14 : vector<1x128xf32> to vector<8x128xf32>
    %16 = arith.addf %13, %15 : vector<8x128xf32>
    %c0_11 = arith.constant 0 : index
    %c0_12 = arith.constant 0 : index
    %17 = vector.load %arg6[%c0_11, %c0_12] : memref<8x128xf32, #tpu.memory_space<vmem>>, vector<8x128xf32>
    tpu.vector_store %arg6[%c0_11, %c0_12], %16 {strides = array<i32>} : memref<8x128xf32, #tpu.memory_space<vmem>>, vector<8x128xf32>,
    return
  }
  func.func @transform_0(%arg0: i32) -> (i32, i32) {
    %c0_i32 = arith.constant 0 : i32
    %c0_i32_0 = arith.constant 0 : i32
    return %arg0, %c0_i32 : i32, i32
  }
  func.func @transform_1(%arg0: i32) -> (i32, i32) {
    %c0_i32 = arith.constant 0 : i32
    %c0_i32_0 = arith.constant 0 : i32
    %c0_i32_1 = arith.constant 0 : i32
    return %c0_i32, %c0_i32_0 : i32, i32
  }
  func.func @transform_2(%arg0: i32) -> (i32, i32) {
    %c0_i32 = arith.constant 0 : i32
    %c0_i32_0 = arith.constant 0 : i32
    %c0_i32_1 = arith.constant 0 : i32
    return %c0_i32, %c0_i32_0 : i32, i32
  }
  func.func @transform_3(%arg0: i32) -> (i32, i32) {
    %c0_i32 = arith.constant 0 : i32
    %c0_i32_0 = arith.constant 0 : i32
    %c0_i32_1 = arith.constant 0 : i32
    return %c0_i32, %c0_i32_0 : i32, i32
  }
  func.func @transform_4(%arg0: i32) -> (i32, i32) {
    %c0_i32 = arith.constant 0 : i32
    %c0_i32_0 = arith.constant 0 : i32
    %c0_i32_1 = arith.constant 0 : i32
    return %c0_i32, %c0_i32_0 : i32, i32
  }
  func.func @transform_5(%arg0: i32) -> (i32, i32) {
    %c0_i32 = arith.constant 0 : i32
    %c0_i32_0 = arith.constant 0 : i32
    return %arg0, %c0_i32 : i32, i32
  }
}

</mosaic_0001>

<bundles_post_ra>
// kernel: tpu_custom_call.1
= control target key start
LH: loop header
LB: loop body
LE: loop exit
PB: predicated region body
PF: predicated region fallthrough
CT: control target
= control target key end

     0   :  { %10 = vsyncpa [#allocation3], 0  ;;  %s485_s0 = inlined_call_operand.hbm [shape: bf16[8,32], index: 0, kind: input, shape index: {}]   ;;  %s486_s1 = inlined_call_operand.hbm [shape: bf16[32,64], index: 1, kind: input, shape index: {}]   ;;  %s487_s2 = inlined_call_operand.vmem [shape: f32[1,64], index: 2, kind: input, shape index: {}]   ;;  %s488_s3 = inlined_call_operand.hbm [shape: bf16[64,128], index: 3, kind: input, shape index: {}]   ;;  %s489_s4 = inlined_call_operand.vmem [shape: f32[1,128], index: 4, kind: input, shape index: {}]   ;;  %s490_s5 = inlined_call_operand.hbm [shape: f32[8,128], index: 5, kind: output, shape index: {}]  }
   0x1   :  { %11 = vsyncpa [#allocation6], 0 }
   0x2   :  { %12 = vsyncpa [#allocation4], 0  ;;  %s387_s18 = smov [#allocation5]   ;;  %s293_s22 = scalar_lea.hbm %s486_s1, 256 }
   0x3   :  { %s28_s19 = sshll.u32 %s387_s18, 4  ;;  %p294_p0 = scmp.ne.s32.totalorder %s486_s1, %s293_s22  ;;  %s29_s19 = int_to_ptr.vmem [resolvable:$true] %s28_s19 }
   0x4   :  { %p297_p1 = scmp.lt.u32.totalorder %s293_s22, %s486_s1 }
   0x6   :  { %p299_p2 = pnand %p297_p1, %p294_p0 }
   0x8   :  { %302 = shalt.err (!%p299_p2)
}
   0x9   :  { %s303_s27 = scalar_lea.vmem %s29_s19, 256  ;;  %p308_p4 = scmp.lt.s32.totalorder %s29_s19, %s29_s19 }
   0xa   :  { %p304_p3 = scmp.ne.s32.totalorder %s29_s19, %s303_s27  ;;  %p309_p5 = scmp.lt.s32.totalorder %s303_s27, %s303_s27 }
   0xc   :  { %p310_p6 = por %p309_p5, %p308_p4 }
   0xe   :  { %p311_p7 = pnand %p310_p6, %p304_p3 }
  0x10   :  { %314 = shalt.err (!%p311_p7)
}
  0x11   :  { %s388_s28 = smov 64   ;;  %s389_s29 = smov 4  }
  0x12   :  { %34 = dma.hbm_to_vmem [thread:$0]  %s486_s1, 256, %s29_s19, [#allocation6], %s388_s28, %s388_s28, %s389_s29  }
  0x13   :  { %s390_s7 = smov [#allocation2]   ;;  %s391_s9 = smov [#allocation7]  }
  0x14   :  { %s19_s8 = sshll.u32 %s390_s7, 4  ;;  %s42_s10 = sshll.u32 %s391_s9, 4  ;;  %s20_s8 = int_to_ptr.vmem [resolvable:$true] %s19_s8  ;;  %s43_s10 = int_to_ptr.vmem [resolvable:$true] %s42_s10 }
  0x15   :  { %s315_s13 = scalar_lea.hbm %s485_s0, 64 }
  0x16   :  { %p316_p8 = scmp.ne.s32.totalorder %s485_s0, %s315_s13  ;;  %p319_p9 = scmp.lt.u32.totalorder %s315_s13, %s485_s0 }
  0x18   :  { %p321_p10 = pnand %p319_p9, %p316_p8 }
  0x1a   :  { %324 = shalt.err (!%p321_p10)
}
  0x1b   :  { %s325_s1 = scalar_lea.vmem %s20_s8, 64  ;;  %p330_p12 = scmp.lt.s32.totalorder %s20_s8, %s20_s8 }
  0x1c   :  { %p326_p11 = scmp.ne.s32.totalorder %s20_s8, %s325_s1  ;;  %p331_p13 = scmp.lt.s32.totalorder %s325_s1, %s325_s1 }
  0x1e   :  { %p332_p0 = por %p331_p13, %p330_p12 }
  0x20   :  { %p333_p1 = pnand %p332_p0, %p326_p11 }
  0x22   :  { %336 = shalt.err (!%p333_p1)
}
  0x23   :  { %22 = dma.hbm_to_vmem [thread:$0]  %s485_s0, 64, %s20_s8, [#allocation3]  }
  0x24   :  { %s337_s22 = scalar_lea.hbm %s488_s3, 512 }
  0x25   :  { %p338_p2 = scmp.ne.s32.totalorder %s488_s3, %s337_s22  ;;  %p341_p3 = scmp.lt.u32.totalorder %s337_s22, %s488_s3 }
  0x27   :  { %p343_p4 = pnand %p341_p3, %p338_p2 }
  0x29   :  { %346 = shalt.err (!%p343_p4)
}
  0x2a   :  { %s347_s27 = scalar_lea.vmem %s43_s10, 512  ;;  %p352_p6 = scmp.lt.s32.totalorder %s43_s10, %s43_s10 }
  0x2b   :  { %p348_p5 = scmp.ne.s32.totalorder %s43_s10, %s347_s27  ;;  %p353_p7 = scmp.lt.s32.totalorder %s347_s27, %s347_s27 }
  0x2d   :  { %p354_p8 = por %p353_p7, %p352_p6 }
  0x2f   :  { %p355_p9 = pnand %p354_p8, %p348_p5 }
  0x31   :  { %358 = shalt.err (!%p355_p9)
}
  0x32   :  { %48 = dma.hbm_to_vmem [thread:$0]  %s488_s3, 512, %s43_s10, [#allocation6], %s388_s28, %s388_s28, %s389_s29  }
  0x33   :  { %381 = dma.done.wait [#allocation3], 64  }
  0x34   :  { %382 = vsyncadd [#allocation3], 4294967232 }
  0x35   :  { %383 = dma.done.wait [#allocation6], 768  }
  0x36   :  { %384 = vsyncadd [#allocation6], 4294966528  ;;  %v392_v0 = vmov 0.0   ;;  %vm393_vm0 = vmmov 0   ;;  %v283_v1 = vld [vmem:[#allocation5] sm:$0xff]   ;;  %v284_v2 = vld [vmem:[#allocation5 + $0x8] sm:$0xff]  }
  0x37   :  { %255 = vmatprep.subr.bf16.mxu0 %v392_v0  ;;  %259 = vmatprep.mubr.msk.bf16.mxu0 %vm393_vm0, %v392_v0  ;;  %v61_v3 = vld [vmem:[#allocation2] sm:$0xf]  ;;  %vm85_vm1 = vcmask 261120   ;;  %v285_v4 = vld [vmem:[#allocation7] sm:$0xff]   ;;  %v287_v6 = vld [vmem:[#allocation7 + $0x10] sm:$0xff]   ;;  %vm175_vm2 = vcmask 523264  }
  0x38   :  { %263 = vmatprep.subr.bf16.mxu1 %v392_v0  ;;  %271 = vmatprep.mubr.msk.bf16.mxu1 %vm393_vm0, %v392_v0  ;;  %v286_v5 = vld [vmem:[#allocation7 + $0x8] sm:$0xff]   ;;  %v288_v7 = vld [vmem:[#allocation7 + $0x18] sm:$0xff]   ;;  %s394_s7 = smov [#allocation8]  }
  0x39   :  { %256 = vmatpush3.bf16.msra.mxu0 %v283_v1  ;;  %264 = vmatpush3.bf16.msra.mxu1 %v285_v4  ;;  %v236_v8 = vld [vmem:[%s487_s2] ss:$0 sm:$0xff]  ;;  %s226_s2 = sshll.u32 %s394_s7, 4  ;;  %s227_s2 = int_to_ptr.vmem [resolvable:$true] %s226_s2 }
  0x3a   :  { %257 = vmatprep.subr.bf16.mxu0 %v392_v0  ;;  %265 = vmatprep.subr.bf16.mxu1 %v392_v0  ;;  %v241_v19 = vld [vmem:[%s489_s4] ss:$0 sm:$0xff]  ;;  %s359_s8 = scalar_lea.vmem %s227_s2, 128  ;;  %p364_p11 = scmp.lt.s32.totalorder %s227_s2, %s227_s2 }
  0x3b   :  { %p360_p10 = scmp.ne.s32.totalorder %s227_s2, %s359_s8  ;;  %p365_p12 = scmp.lt.s32.totalorder %s359_s8, %s359_s8 }
  0x3d   :  { %258 = vmatpush3.bf16.msra.mxu0 %v284_v2  ;;  %266 = vmatpush3.bf16.msra.mxu1 %v286_v5  ;;  %p366_p13 = por %p365_p12, %p364_p11 }
  0x3e   :  { %267 = vmatprep.subr.bf16.mxu1 %v392_v0 }
  0x3f   :  { %p367_p0 = pnand %p366_p13, %p360_p10 }
  0x40   :  { %260 = vmatmul.mubr.msk.bf16.vlgmr.msra.gmra.mrb[0].mxu0 %vm85_vm1, %v61_v3 }
  0x41   :  { %268 = vmatpush3.bf16.msra.mxu1 %v287_v6 }
  0x42   :  { %269 = vmatprep.subr.bf16.mxu1 %v392_v0 }
  0x45   :  { %270 = vmatpush3.bf16.msra.mxu1 %v288_v7 }
 0x113   :  { %v123_v9 = vpop.f32.mrb[0].mxu0 }
 0x114   :  { %v124_v10 = vadd.f32 %v236_v8, %v123_v9  ;;  %v261_v11 = vpop.f32.mrb[1].mxu0 }
 0x115   :  { %v126_v12 = vpop.f32.mrb[2].mxu0 }
 0x116   :  { %v240_v13 = vmul.f32 -1.442695, %v124_v10  ;;  %v262_v14 = vpop.f32.mrb[3].mxu0 }
 0x118   :  { %289 = vpow2.f32 %v240_v13 }
 0x122   :  { %v290_v15 = vpop.eup %289 }
 0x123   :  { %v132_v16 = vadd.f32 1.0, %v290_v15 }
 0x125   :  { %291 = vrcp.f32 %v132_v16 }
 0x12f   :  { %v292_v17 = vpop.eup %291 }
 0x130   :  { %v135_v18 = vpack.c.bf16 %v292_v17, %v292_v17 }
 0x132   :  { %272 = vmatmul.mubr.msk.bf16.vlgmr.msra.gmra.mrb[0].mxu1 %vm175_vm2, %v135_v18 }
 0x205   :  { %v213_v20 = vpop.f32.mrb[0].mxu1 }
 0x206   :  { %v214_v21 = vadd.f32 %v241_v19, %v213_v20  ;;  %v273_v22 = vpop.f32.mrb[1].mxu1 }
 0x207   :  { %v216_v23 = vpop.f32.mrb[2].mxu1 }
 0x208   :  { %219 = vst [vmem:[#allocation8] sm:$0xff] %v214_v21  ;;  %v274_v24 = vpop.f32.mrb[3].mxu1 }
 0x209   :  { %370 = shalt.err (!%p367_p0)
}
 0x20a   :  { %s371_s4 = scalar_lea.hbm %s490_s5, 128 }
 0x20b   :  { %p372_p1 = scmp.ne.s32.totalorder %s490_s5, %s371_s4  ;;  %p375_p2 = scmp.lt.u32.totalorder %s371_s4, %s490_s5 }
 0x20d   :  { %p377_p3 = pnand %p375_p2, %p372_p1 }
 0x20f   :  { %380 = shalt.err (!%p377_p3)
}
 0x210   :  { %229 = dma.vmem_to_hbm [thread:$0]  %s227_s2, 128, %s490_s5, [#allocation4]  }
 0x211   :  { %385 = dma.done.wait [#allocation4], 128  }
 0x212   :  { %386 = vsyncadd [#allocation4], 4294967168 }
 0x213   :  { %233 = vsyncpa [#allocation3], 1 }
 0x214   :  { %234 = vsyncpa [#allocation6], 1 }
 0x215   :  { %235 = vsyncpa [#allocation4], 1 }

</bundles_post_ra>
